<compile_context>
chip_gen: v6e
topology: v6e:2x2x1
jax: 0.10.0
libtpu: 0.0.40
codegen_flags: <defaults>
</compile_context>

<pallas_src>
import math

import jax
import jax.numpy as jnp
from jax.experimental import pallas as pl
from jax.experimental.pallas import tpu as pltpu


def _round_up(x, m):
    return (x + m - 1) // m * m


# ----------------------------------------------------------------------------
# Kernel: generate a (TM, D) tile of sinusoidal positions in-register, then one
# fused linear.  params:(2,D) f32 [freq; parity], W:(D,D) bf16, b:(1,D) f32.
# Weights / constants are VMEM-resident across the row grid; only the bf16
# output tile streams to HBM.
# ----------------------------------------------------------------------------
def _pe_fused_linear_kernel(params_ref, w_ref, b_ref, out_ref):
    tm, d = out_ref.shape
    row0 = pl.program_id(0) * tm
    rows = (row0 + jax.lax.broadcasted_iota(jnp.int32, (tm, d), 0)).astype(
        jnp.float32)                                    # (TM, D) position index

    params = params_ref[...]                            # (2, D) f32
    freq = params[0:1, :]                               # div_term repeated per lane pair
    is_even = params[1:2, :] > 0.5                      # True on even lanes -> sin

    ang = rows * freq                                   # (TM, D)
    x = jnp.where(is_even, jnp.sin(ang), jnp.cos(ang)).astype(jnp.bfloat16)

    y = jnp.dot(x, w_ref[...], preferred_element_type=jnp.float32)
    out_ref[...] = (y + b_ref[...]).astype(out_ref.dtype)


def fuse_linears(wb, bb, wc, bc):
    """One-time algebraic fold of the two chained Linear layers (f32)."""
    w_fused = wb @ wc                   # (D, D)
    b_fused = bb @ wc + bc              # (D,)
    return w_fused, b_fused


def make_sinusoid_params(d_model):
    """(2, d_model) constant: row 0 = per-lane frequency, row 1 = even-lane mask."""
    assert d_model % 2 == 0, "d_model must be even (sin/cos interleave)"
    div_term = jnp.exp(jnp.arange(0, d_model, 2, dtype=jnp.float32)
                       * (-math.log(10000.0) / d_model))        # (D/2,)
    freq = jnp.repeat(div_term, 2)                              # (D,)
    parity = jnp.tile(jnp.array([1.0, 0.0], jnp.float32), d_model // 2)
    return jnp.stack([freq, parity], axis=0)                    # (2, D)


def precompute_pos_encoding_table(d_model, max_len, wb, bb, wc, bc, *,
                                  tile_rows=1024, min_blocks=4,
                                  out_dtype=jnp.bfloat16):
    """Compute c(b(pe)) for ALL max_len rows with a single Pallas call.

    wb, wc : (d_model, d_model) f32, stored (in, out) = transpose of PyTorch
    bb, bc : (d_model,) f32
    Returns: (max_len, d_model) out_dtype table; forward() slices leading rows.
    """
    w_fused, b_fused = fuse_linears(wb, bb, wc, bc)

    # bf16 weight, f32 accumulate (native MXU path, halves resident weight bytes).
    w_bf16 = w_fused.astype(jnp.bfloat16)
    b_f32 = b_fused.reshape(1, d_model).astype(jnp.float32)
    params = make_sinusoid_params(d_model)

    # Row tile: as big as tile_rows, but keep >= min_blocks blocks so both v7x
    # TensorCores get work; always a multiple of 8 sublanes.
    padded_rows = _round_up(max_len, 8)
    tm = min(tile_rows, max(8, _round_up(pl.cdiv(padded_rows, min_blocks), 8)))
    grid = (pl.cdiv(max_len, tm),)

    # Resident fused weight: single-buffer it when it is big (constant index_map
    # => double-buffering is pure VMEM waste; matters for v7x's 64 MiB VMEM).
    w_bytes = d_model * d_model * 2
    if w_bytes >= (4 << 20):
        # TODO(synk): add an N-tiling grid axis if d_model ever reaches ~2048+.
        w_spec = pl.BlockSpec((d_model, d_model), lambda i: (0, 0),
                              pipeline_mode=pl.Buffered(1))
        w_buffers = 1
    else:
        w_spec = pl.BlockSpec((d_model, d_model), lambda i: (0, 0))
        w_buffers = 2

    # Explicit scoped-VMEM budget: output tiles (double-buffered), in-kernel f32
    # temporaries for the sinusoid, resident weight, tiny constants + headroom.
    out_tile_bytes = tm * d_model * jnp.dtype(out_dtype).itemsize
    vmem_est = (2 * out_tile_bytes
                + 4 * tm * d_model * 4
                + w_buffers * w_bytes
                + 2 * 3 * d_model * 4)
    vmem_limit = int(min(max(2 * vmem_est, 16 << 20), 64 << 20))

    return pl.pallas_call(
        _pe_fused_linear_kernel,
        out_shape=jax.ShapeDtypeStruct((max_len, d_model), out_dtype),
        grid=grid,
        in_specs=[
            pl.BlockSpec((2, d_model), lambda i: (0, 0)),        # sinusoid consts
            w_spec,                                              # fused weight
            pl.BlockSpec((1, d_model), lambda i: (0, 0)),        # fused bias
        ],
        out_specs=pl.BlockSpec((tm, d_model), lambda i: (i, 0)),
        compiler_params=pltpu.CompilerParams(
            dimension_semantics=("parallel",),
            vmem_limit_bytes=vmem_limit),
    )(params, w_bf16, b_f32)


def positional_encoding_forward(seq_len, table):
    """forward(t) == table[:t.shape[0]] once the table has been precomputed.

    seq_len must be a static Python int (the hot path is a free slice). If
    seq_len is ever traced inside a jit, switch to lax.dynamic_slice with a
    static max bound instead.
    """
    if seq_len > table.shape[0]:
        raise ValueError(f"seq_len={seq_len} exceeds max_len={table.shape[0]}")
    return table[:seq_len]


# ----------------------------------------------------------------------------
# Host-side reference helpers (match the PyTorch module's __init__ exactly).
# ----------------------------------------------------------------------------
def make_pe_table(max_len, d_model):
    position = jnp.arange(max_len, dtype=jnp.float32)[:, None]          # (L, 1)
    div_term = jnp.exp(jnp.arange(0, d_model, 2, dtype=jnp.float32)
                       * (-math.log(10000.0) / d_model))                # (D/2,)
    ang = position * div_term                                           # (L, D/2)
    pe = jnp.zeros((max_len, d_model), dtype=jnp.float32)
    pe = pe.at[:, 0::2].set(jnp.sin(ang))
    pe = pe.at[:, 1::2].set(jnp.cos(ang))
    return pe


def init_linear(key, in_features, out_features):
    # PyTorch nn.Linear default: U(-1/sqrt(in), 1/sqrt(in)) for weight & bias.
    kw, kb = jax.random.split(key)
    bound = 1.0 / math.sqrt(in_features)
    w = jax.random.uniform(kw, (in_features, out_features),
                           minval=-bound, maxval=bound, dtype=jnp.float32)
    b = jax.random.uniform(kb, (out_features,),
                           minval=-bound, maxval=bound, dtype=jnp.float32)
    return w, b


if __name__ == "__main__":
    d_model = 128
    max_len = 96          # small demo value (module default is 5000)
    seq = 8

    key = jax.random.PRNGKey(0)
    kb, kc, kt = jax.random.split(key, 3)

    wb, bb = init_linear(kb, d_model, d_model)
    wc, bc = init_linear(kc, d_model, d_model)

    # One-time precompute of the full bf16 output table (single Pallas launch,
    # pe generated in-kernel, >= 4 row blocks on the parallel axis).
    table = precompute_pos_encoding_table(d_model, max_len, wb, bb, wc, bc)
    table = jax.block_until_ready(table)

    # forward(t): only t's leading dim (seq length) matters.
    t = jax.random.normal(kt, (seq, d_model), dtype=jnp.float32)
    out = positional_encoding_forward(t.shape[0], table)
    out = jax.block_until_ready(out)

    # Reference: unfused f32 chain, exactly the PyTorch forward semantics.
    pe = make_pe_table(max_len, d_model)
    ref_full = (pe @ wb + bb) @ wc + bc
    ref = ref_full[:seq]

    assert out.shape == (seq, d_model)
    assert out.dtype == jnp.bfloat16
    # bf16 operands / bf16 output store, f32 accumulation -> ~1e-2 abs error
    # vs the pure-f32 reference chain.
    assert jnp.allclose(out.astype(jnp.float32), ref, atol=2.5e-2, rtol=2.5e-2)
    assert jnp.allclose(table.astype(jnp.float32), ref_full,
                        atol=2.5e-2, rtol=2.5e-2)

    # Second seq length reuses the same precomputed table (no new launch).
    out40 = jax.block_until_ready(positional_encoding_forward(40, table))
    assert jnp.allclose(out40.astype(jnp.float32), ref_full[:40],
                        atol=2.5e-2, rtol=2.5e-2)

    print("KERNEL_OK")
</pallas_src>

<mosaic_0001>
module attributes {stable_mosaic.version = 11 : i64} {
  func.func @_pe_fused_linear_kernel(%arg0: i32, %arg1: memref<2x128xf32, #tpu.memory_space<vmem>>, %arg2: memref<128x128xbf16, #tpu.memory_space<vmem>>, %arg3: memref<1x128xf32, #tpu.memory_space<vmem>>, %arg4: memref<24x128xbf16, #tpu.memory_space<vmem>>) attributes {dimension_semantics = [#tpu.dimension_semantics<parallel>], iteration_bounds = array<i64: 4>, scalar_prefetch = 0 : i64, scratch_operands = 0 : i64, tpu.core_type = #tpu.core_type<tc>, window_params = [{pipeline_mode = #tpu.pipeline_mode<synchronous>, transform_indices = @transform_0, window_bounds = array<i64: 2, 128>}, {pipeline_mode = #tpu.pipeline_mode<synchronous>, transform_indices = @transform_1, window_bounds = array<i64: 128, 128>}, {pipeline_mode = #tpu.pipeline_mode<synchronous>, transform_indices = @transform_2, window_bounds = array<i64: 1, 128>}, {transform_indices = @transform_3, window_bounds = array<i64: 24, 128>}]} {
    %c24_i32 = arith.constant 24 : i32
    %0 = arith.muli %arg0, %c24_i32 : i32
    %1 = tpu.iota {dimensions = array<i32: 0>} : vector<24x128xi32>
    %2 = vector.broadcast %0 : i32 to vector<24x128xi32>
    %3 = arith.addi %2, %1 : vector<24x128xi32>
    %4 = arith.sitofp %3 : vector<24x128xi32> to vector<24x128xf32>
    %c0 = arith.constant 0 : index
    %c0_0 = arith.constant 0 : index
    %5 = vector.load %arg1[%c0, %c0_0] : memref<2x128xf32, #tpu.memory_space<vmem>>, vector<2x128xf32>
    %6 = vector.extract_strided_slice %5 {offsets = [0, 0], sizes = [1, 128], strides = [1, 1]} : vector<2x128xf32> to vector<1x128xf32>
    %7 = vector.extract_strided_slice %5 {offsets = [1, 0], sizes = [1, 128], strides = [1, 1]} : vector<2x128xf32> to vector<1x128xf32>
    %cst = arith.constant 5.000000e-01 : f32
    %8 = vector.broadcast %cst : f32 to vector<1x128xf32>
    %9 = arith.cmpf ogt, %7, %8 : vector<1x128xf32>
    %10 = vector.broadcast %6 : vector<1x128xf32> to vector<24x128xf32>
    %11 = arith.mulf %4, %10 : vector<24x128xf32>
    %12 = math.sin %11 : vector<24x128xf32>
    %13 = math.cos %11 : vector<24x128xf32>
    %14 = vector.shape_cast %9 : vector<1x128xi1> to vector<1x128xi1>
    %15 = vector.broadcast %14 : vector<1x128xi1> to vector<24x128xi1>
    %16 = arith.select %15, %12, %13 : vector<24x128xi1>, vector<24x128xf32>
    %17 = arith.truncf %16 : vector<24x128xf32> to vector<24x128xbf16>
    %c0_1 = arith.constant 0 : index
    %c0_2 = arith.constant 0 : index
    %18 = vector.load %arg2[%c0_1, %c0_2] : memref<128x128xbf16, #tpu.memory_space<vmem>>, vector<128x128xbf16>
    %cst_3 = arith.constant dense<0.000000e+00> : vector<24x128xf32>
    %19 = tpu.matmul %17, %18, %cst_3 {dimension_numbers = #tpu.dot_dimension_numbers<[1], [0], [0], [1], [0, 0, 1, 1], [], []>} : vector<24x128xbf16>, vector<128x128xbf16>, vector<24x128xf32> -> vector<24x128xf32>
    %c0_4 = arith.constant 0 : index
    %c0_5 = arith.constant 0 : index
    %20 = vector.load %arg3[%c0_4, %c0_5] : memref<1x128xf32, #tpu.memory_space<vmem>>, vector<1x128xf32>
    %21 = vector.broadcast %20 : vector<1x128xf32> to vector<24x128xf32>
    %22 = arith.addf %19, %21 : vector<24x128xf32>
    %23 = arith.truncf %22 : vector<24x128xf32> to vector<24x128xbf16>
    %c0_6 = arith.constant 0 : index
    %c0_7 = arith.constant 0 : index
    %24 = vector.load %arg4[%c0_6, %c0_7] : memref<24x128xbf16, #tpu.memory_space<vmem>>, vector<24x128xbf16>
    tpu.vector_store %arg4[%c0_6, %c0_7], %23 {strides = array<i32>} : memref<24x128xbf16, #tpu.memory_space<vmem>>, vector<24x128xbf16>,
    return
  }
  func.func @transform_0(%arg0: i32) -> (i32, i32) {
    %c0_i32 = arith.constant 0 : i32
    %c0_i32_0 = arith.constant 0 : i32
    %c0_i32_1 = arith.constant 0 : i32
    return %c0_i32, %c0_i32_0 : i32, i32
  }
  func.func @transform_1(%arg0: i32) -> (i32, i32) {
    %c0_i32 = arith.constant 0 : i32
    %c0_i32_0 = arith.constant 0 : i32
    %c0_i32_1 = arith.constant 0 : i32
    return %c0_i32, %c0_i32_0 : i32, i32
  }
  func.func @transform_2(%arg0: i32) -> (i32, i32) {
    %c0_i32 = arith.constant 0 : i32
    %c0_i32_0 = arith.constant 0 : i32
    %c0_i32_1 = arith.constant 0 : i32
    return %c0_i32, %c0_i32_0 : i32, i32
  }
  func.func @transform_3(%arg0: i32) -> (i32, i32) {
    %c0_i32 = arith.constant 0 : i32
    %c0_i32_0 = arith.constant 0 : i32
    return %arg0, %c0_i32 : i32, i32
  }
}

</mosaic_0001>

<bundles_post_ra>
// kernel: tpu_custom_call.1
= control target key start
LH: loop header
LB: loop body
LE: loop exit
PB: predicated region body
PF: predicated region fallthrough
CT: control target
= control target key end

     0   :  { %8 = vsyncpa [#allocation3], 0  ;;  %s1730_s0 = inlined_call_operand.hbm [shape: f32[2,128], index: 0, kind: input, shape index: {}]   ;;  %s1731_s1 = inlined_call_operand.hbm [shape: bf16[128,128], index: 1, kind: input, shape index: {}]   ;;  %s1732_s2 = inlined_call_operand.vmem [shape: f32[1,128], index: 2, kind: input, shape index: {}]   ;;  %s1733_s3 = inlined_call_operand.hbm [shape: bf16[96,128], index: 3, kind: output, shape index: {}]  }
   0x1   :  { %9 = vsyncpa [#allocation6], 0 }
   0x2   :  { %10 = vsyncpa [#allocation4], 0 }
   0x3   :  { %12 = vsyncpa [#allocation4 + $0x1], 0  ;;  %s1398_s12 = smov 0   ;;  %s1400_s13 = smov 0  }
   0x4   :  { %s1402_s14 = smov 0   ;;  %s1404_s15 = smov 0  }
   0x5 LB: > { %s1419_s16 = sadd.s32 4294967295, %s1362_s15   ;;  %s1053_s17 = sadd.s32 4294967294, %s1362_s15   ;;  %s1362_s15 = sphi %s1404_s15, %s1753_s15   ;;  %s1358_s14 = sphi %s1402_s14, %s1752_s14   ;;  %s1354_s13 = sphi %s1400_s13, %s1751_s13   ;;  %s1350_s12 = sphi %s1398_s12, %s1750_s12  }
   0x6   : > { %s1423_s18 = sadd.s32 1, %s1362_s15   ;;  %s88_s19 = sadd.s32 1, %s1358_s14 }
   0x7   : > { %s85_s20 = ssub.s32 %s1362_s15, %s1423_s18  ;;  %p98_p0 = scmp.ne.s32.totalorder %s1358_s14, %s1354_s13 }
   0x8   : > { %p86_p1 = scmp.eq.s32.totalorder %s85_s20, 0  ;;  %p99_p2 = scmp.eq.s32.totalorder %s1419_s16, 3 }
   0x9   : > { %p104_p3 = scmp.ne.s32.totalorder %s1354_s13, %s1350_s12  ;;  %p105_p4 = scmp.eq.s32.totalorder %s1053_s17, 3 }
   0xa   : > { %s1434_s21 = scalar_select %p86_p1, %s1358_s14, %s88_s19  }
   0xb   : > { %p1436_p5 = por %p99_p2, %p98_p0  ;;  %p1440_p6 = por %p105_p4, %p104_p3 }
   0xc   : > { %p1054_p7 = scmp.ge.s32.totalorder %s1362_s15, 1  ;;  %p112_p8 = scmp.lt.s32.totalorder %s1362_s15, 5 }
   0xd   : > { %s1737_s22 = scalar_select %p1436_p5, 1, 0 }
   0xe   : > { %s1738_s23 = scalar_select %p1440_p6, 1, 0 }
   0xf   : > { %p1734_p9 = scmp.eq.s32.totalorder %s1419_s16, 0  ;;  %p1447_p10 = pnand %p1054_p7, %p112_p8 }
  0x10   : > { %s1364_s25 = smov [#allocation2]   ;;  %s1365_s27 = smov [#allocation5]  }
  0x11   : > { %s1739_s24 = scalar_select %p1447_p10, 1, 0 }
  0x12   : > { %s125_s26 = sshll.u32 %s1364_s25, 4  ;;  %p1161_p11 = pneg %p1447_p10  ;;  %s126_s26 = int_to_ptr.vmem [resolvable:$true] %s125_s26 }
  0x13   : > { %s135_s28 = sshll.u32 %s1365_s27, 4  ;;  %s1253_s30 = scalar_lea.vmem %s126_s26, 32  ;;  %s136_s28 = int_to_ptr.vmem [resolvable:$true] %s135_s28 }
  0x14   : > { %p1455_p12 = pnand %p1734_p9, %p1161_p11  ;;  %p1254_p0 = scmp.ne.s32.totalorder %s126_s26, %s1253_s30 }
  0x15   : > { %p1261_p3 = scmp.lt.s32.totalorder %s126_s26, %s126_s26  ;;  %p1262_p4 = scmp.lt.s32.totalorder %s1253_s30, %s1253_s30 }
  0x16   : > { %p1244_p13 = pneg %p1455_p12 }
  0x17   : > { %p1263_p7 = por %p1262_p4, %p1261_p3 }
  0x18   : > { %p1256_p1 = pnand %p1254_p0, %p1244_p13 }
  0x1a   : > { %p1257_p2 = pneg %p1256_p1 }
  0x1c   : > { %p1264_p8 = pnand %p1263_p7, %p1257_p2 }
  0x1e   : > { %1267 = shalt.err (!%p1264_p8)
}
  0x1f   : > { %1164 = dma.hbm_to_vmem [thread:$0]  (!%p1455_p12), %s1730_s0, 32, %s126_s26, [#allocation3]  }
  0x20   : > { %s1279_s6 = scalar_lea.vmem %s136_s28, 1024  ;;  %p1287_p0 = scmp.lt.s32.totalorder %s136_s28, %s136_s28 }
  0x21   : > { %p1280_p11 = scmp.ne.s32.totalorder %s136_s28, %s1279_s6  ;;  %p1288_p1 = scmp.lt.s32.totalorder %s1279_s6, %s1279_s6 }
  0x23   : > { %p1282_p9 = pnand %p1280_p11, %p1244_p13  ;;  %p1289_p5 = por %p1288_p1, %p1287_p0 }
  0x25   : > { %p1283_p6 = pneg %p1282_p9 }
  0x27   : > { %p1290_p10 = pnand %p1289_p5, %p1283_p6 }
  0x29   : > { %1293 = shalt.err (!%p1290_p10)
}
  0x2a   : > { %s1366_s7 = smov 64   ;;  %s1367_s8 = smov 4  }
  0x2b   : > { %1167 = dma.hbm_to_vmem [thread:$0]  (!%p1455_p12), %s1731_s1, 1024, %s136_s28, [#allocation6], %s1366_s7, %s1366_s7, %s1367_s8  }
  0x2c   : > { %p1741_p2 = scmp.ne.s32.totalorder %s1739_s24, 0 }
  0x2d   : > { %p1742_p3 = scmp.eq.s32.totalorder (!%p1741_p2), %s1419_s16, 0 }
  0x2e   : > { %154 = sbr.rel (%p1741_p2) target bundleno = 397 (0x18d), region = 32 }
  0x33   : > { %1337 = dma.done.wait (%p1742_p3), [#allocation3], 32   ;;  %p1743_p9 = pmov %p1742_p3 }
  0x34   : > { %p1744_p5 = pmov %p1742_p3 }
  0x35   : > { %1339 = vsyncadd (%p1743_p9), [#allocation3], 4294967264 }
  0x36   : > { %1341 = dma.done.wait (%p1744_p5), [#allocation6], 1024   ;;  %p1745_p6 = pmov %p1742_p3 }
  0x37   : > { %v180_v0 = vlaneseq  ;;  %s179_s11 = smul.u32 24, %s1419_s16  ;;  %v1222_v4 = vld [vmem:[#allocation5 + $0x38] sm:$0xff]   ;;  %v1223_v6 = vld [vmem:[#allocation5 + $0x30] sm:$0xff]   ;;  %v1224_v10 = vld [vmem:[#allocation5 + $0x28] sm:$0xff]   ;;  %v1368_v19 = vmov 0   ;;  %s174_s17 = sand.u32 1, %s1354_s13  }
  0x38   : > { %1343 = vsyncadd (%p1745_p6), [#allocation6], 4294966272  ;;  %1118 = vmatprep.subr.bf16.mxu0 %v1222_v4  ;;  %v1225_v16 = vld [vmem:[#allocation5 + $0x20] sm:$0xff]   ;;  %v191_v17 = vld [vmem:[#allocation2] sm:$0x3]  ;;  %s1138_s19 = smul.u32 12, %s174_s17 }
  0x39   : > { %v181_v1 = vshrl.u32 %v180_v0, 7  ;;  %v184_v5 = vstv %s179_s11  ;;  %1119 = vmatpush3.bf16.msra.mxu0 %v1222_v4  ;;  %vm192_vm0 = vcmp.gt.f32.partialorder %v191_v17, 0.5  ;;  %v1226_v25 = vld [vmem:[#allocation5 + $0x18] sm:$0xff]   ;;  %v1227_v32 = vld [vmem:[#allocation5 + $0x10] sm:$0xff]   ;;  %v1228_v41 = vld [vmem:[#allocation5 + $0x8] sm:$0xff]   ;;  %s1102_s25 = smul.u32 192, %s1419_s16 }
  0x3a   : > { %1120 = vmatprep.subr.bf16.mxu0 %v1223_v6  ;;  %v821_v20 = vsel %vm192_vm0, 1, %v1368_v19  ;;  %v1229_v50 = vld [vmem:[#allocation5] sm:$0xff]   ;;  %v1369_v56 = vmov 683565275   ;;  %v1370_v58 = vmov 2475754826  }
  0x3b   : > { %v182_v2 = vadd.s32 8, %v181_v1  ;;  %v183_v3 = vadd.s32 16, %v181_v1  ;;  %v185_v7 = vadd.s32 %v184_v5, %v181_v1  ;;  %v195_v11 = vsub.s32 0, %v181_v1  ;;  %s176_s26 = scalar_lea.vmem [#allocation7], %s1138_s19  ;;  %s1688_s30 = scalar_lea.hbm %s1733_s3, %s1102_s25 }
  0x3c   : > { %v824_v15 = vsub.s32 1, %v181_v1  ;;  %v1371_v60 = vmov 2131351028   ;;  %v1372_v62 = vmov 2102212464   ;;  %s981_s27 = sshll.u32 %s176_s26, 4  ;;  %s1683_s27 = int_to_ptr.vmem [resolvable:$true] %s981_s27 }
  0x3d   : > { %v186_v8 = vadd.s32 %v184_v5, %v182_v2  ;;  %v187_v9 = vadd.s32 %v184_v5, %v183_v3  ;;  %1121 = vmatpush3.bf16.msra.mxu0 %v1223_v6  ;;  %v188_v12 = vcvt.s32.f32 %v185_v7  ;;  %v196_v18 = vrot.slane %v191_v17, %v195_v11  ;;  %s1690_s4 = scalar_lea.sflag [#allocation4], %s174_s17  ;;  %s1294_s16 = scalar_lea.vmem %s1683_s27, 192 }
  0x3e   : > { %1122 = vmatprep.subr.bf16.mxu0 %v1224_v10  ;;  %v1494_v24 = vrot.slane %v821_v20, %v824_v15  ;;  %v1373_v0 = vmov 920167782   ;;  %p1295_p10 = scmp.ne.s32.totalorder %s1683_s27, %s1294_s16  ;;  %p1748_p12 = scmp.ne.s32.totalorder %s1737_s22, 0 }
  0x3f   : > { %v189_v13 = vcvt.s32.f32 %v186_v8  ;;  %v190_v14 = vcvt.s32.f32 %v187_v9  ;;  %v1488_v21 = vmul.f32 %v196_v18, %v188_v12  ;;  %v1374_v8 = vmov 1326507024   ;;  %s1375_s5 = smov [#allocation7]  }
  0x40   : > { %p1296_p13 = pnand %p1295_p10, %p1748_p12  ;;  %s1298_s6 = sshll.u32 %s1375_s5, 4  ;;  %s1299_s6 = int_to_ptr.vmem [resolvable:$false] %s1298_s6 }
  0x41   : > { %1123 = vmatpush3.bf16.msra.mxu0 %v1224_v10  ;;  %v1490_v22 = vmul.f32 %v196_v18, %v189_v13  ;;  %v1492_v23 = vmul.f32 %v196_v18, %v190_v14  ;;  %v200_v26 = vand.u32 2147483647, %v1488_v21  ;;  %v203_v27 = vand.u32 2139095040, %v1488_v21  ;;  %s1300_s7 = scalar_lea.vmem %s1299_s6, 384  ;;  %p1301_p7 = scmp.lt.s32.totalorder %s1683_s27, %s1299_s6 }
  0x42   : > { %1124 = vmatprep.subr.bf16.mxu0 %v1225_v16  ;;  %p1297_p4 = pneg %p1296_p13  ;;  %p1302_p8 = scmp.lt.s32.totalorder %s1300_s7, %s1294_s16 }
  0x43   : > { %v304_v28 = vand.u32 2147483647, %v1490_v22  ;;  %v307_v29 = vand.u32 2139095040, %v1490_v22  ;;  %v204_v30 = vshrl.u32 %v203_v27, 23  ;;  %v411_v31 = vand.u32 2139095040, %v1492_v23 }
  0x44   : > { %v207_v33 = vand.u32 8388607, %v200_v26  ;;  %p1303_p11 = por %p1302_p8, %p1301_p7 }
  0x45   : > { %1125 = vmatpush3.bf16.msra.mxu0 %v1225_v16  ;;  %v308_v34 = vshrl.u32 %v307_v29, 23  ;;  %v311_v35 = vand.u32 8388607, %v304_v28  ;;  %v1060_v36 = vadd.s32 4294967169, %v204_v30  ;;  %v412_v37 = vshrl.u32 %v411_v31, 23 }
  0x46   : > { %1126 = vmatprep.subr.bf16.mxu0 %v1226_v25  ;;  %v208_v42 = vor.u32 8388608, %v207_v33  ;;  %p1304_p0 = pnand %p1303_p11, %p1297_p4 }
  0x47   : > { %v1064_v38 = vadd.s32 4294967169, %v308_v34  ;;  %v210_v39 = vadd.s32 1, %v1060_v36  ;;  %v1068_v40 = vadd.s32 4294967169, %v412_v37  ;;  %v312_v43 = vor.u32 8388608, %v311_v35 }
  0x48   : > { %v1505_v51 = vshll.u32 %v208_v42, 8 }
  0x49   : > { %1127 = vmatpush3.bf16.msra.mxu0 %v1226_v25  ;;  %v314_v44 = vadd.s32 1, %v1064_v38  ;;  %vm211_vm1 = vcmp.gt.s32.totalorder %v210_v39, 0  ;;  %v418_v45 = vadd.s32 1, %v1068_v40  ;;  %v1509_v54 = vshll.u32 %v312_v43, 8 }
  0x4a   : > { %1128 = vmatprep.subr.bf16.mxu0 %v1227_v32  ;;  %v212_v46 = vsel %vm211_vm1, %v210_v39, 0 }
  0x4b   : > { %vm315_vm2 = vcmp.gt.s32.totalorder %v314_v44, 0  ;;  %v213_v47 = vshrl.u32 %v212_v46, 5  ;;  %v214_v48 = vand.u32 31, %v212_v46  ;;  %vm419_vm3 = vcmp.gt.s32.totalorder %v418_v45, 0 }
  0x4c   : > { %v316_v49 = vsel %vm315_vm2, %v314_v44, 0  ;;  %v1517_v2 = vsel %vm419_vm3, %v418_v45, 0 }
  0x4d   : > { %1129 = vmatpush3.bf16.msra.mxu0 %v1227_v32  ;;  %v1507_v52 = vshrl.u32 %v316_v49, 5  ;;  %v318_v53 = vand.u32 31, %v316_v49  ;;  %v215_v55 = vsub.s32 32, %v214_v48  ;;  %v217_v57 = vshll.u32 %v1369_v56, %v214_v48 }
  0x4e   : > { %1130 = vmatprep.subr.bf16.mxu0 %v1228_v41  ;;  %v220_v59 = vshll.u32 %v1370_v58, %v214_v48  ;;  %v223_v61 = vshll.u32 %v1371_v60, %v214_v48  ;;  %v226_v63 = vshll.u32 %v1372_v62, %v214_v48  ;;  %v229_v1 = vshll.u32 %v1373_v0, %v214_v48 }
  0x4f   : > { %vm232_vm4 = vcmp.lt.s32.totalorder %v213_v47, 1  ;;  %v216_v3 = vshrl.u32 %v1369_v56, %v215_v55  ;;  %v218_v4 = vshrl.u32 %v1370_v58, %v215_v55  ;;  %v221_v5 = vshrl.u32 %v1371_v60, %v215_v55 }
  0x50   : > { %v224_v6 = vshrl.u32 %v1372_v62, %v215_v55  ;;  %v227_v7 = vshrl.u32 %v1373_v0, %v215_v55  ;;  %v230_v9 = vshrl.u32 %v1374_v8, %v215_v55  ;;  %vm233_vm5 = vcmp.lt.s32.totalorder %v213_v47, 2 }
  0x51   : > { %1131 = vmatpush3.bf16.msra.mxu0 %v1228_v41  ;;  %vm235_vm6 = vcmp.lt.s32.totalorder %v213_v47, 4  ;;  %v219_v10 = vor.u32 %v218_v4, %v217_v57  ;;  %v222_v11 = vor.u32 %v221_v5, %v220_v59  ;;  %v319_v13 = vsub.s32 32, %v318_v53 }
  0x52   : > { %1132 = vmatprep.subr.bf16.mxu0 %v1229_v50  ;;  %v225_v12 = vor.u32 %v224_v6, %v223_v61  ;;  %v228_v14 = vor.u32 %v227_v7, %v226_v63  ;;  %v231_v15 = vor.u32 %v230_v9, %v229_v1  ;;  %vm234_vm7 = vcmp.lt.s32.totalorder %v213_v47, 3 }
  0x53   : > { %v321_v16 = vshll.u32 %v1369_v56, %v318_v53  ;;  %v236_v17 = vsel %vm232_vm4, %v216_v3, %v219_v10  ;;  %v240_v19 = vsel %vm232_vm4, %v219_v10, %v222_v11  ;;  %v324_v30 = vshll.u32 %v1370_v58, %v318_v53 }
  0x54   : > { %v237_v18 = vsel %vm235_vm6, %v225_v12, 2102212464  ;;  %v244_v20 = vsel %vm232_vm4, %v222_v11, %v225_v12  ;;  %v241_v27 = vsel %vm235_vm6, %v228_v14, 920167782  ;;  %v245_v29 = vsel %vm235_vm6, %v231_v15, 1326507024 }
  0x55   : > { %1133 = vmatpush3.bf16.msra.mxu0 %v1229_v50  ;;  %v238_v25 = vsel %vm234_vm7, %v222_v11, %v237_v18  ;;  %v242_v31 = vsel %vm234_vm7, %v225_v12, %v241_v27  ;;  %v246_v32 = vsel %vm234_vm7, %v228_v14, %v245_v29  ;;  %v320_v33 = vshrl.u32 %v1369_v56, %v319_v13 }
  0x56   : > { %v322_v34 = vshrl.u32 %v1370_v58, %v319_v13  ;;  %v239_v35 = vsel %vm233_vm5, %v236_v17, %v238_v25  ;;  %v243_v36 = vsel %vm233_vm5, %v240_v19, %v242_v31  ;;  %v247_v37 = vsel %vm233_vm5, %v244_v20, %v246_v32 }
  0x57   : > { %v325_v38 = vshrl.u32 %v1371_v60, %v319_v13  ;;  %v1540_v39 = vmul.u32.u64.low %v1505_v51, %v247_v37  ;;  %v1541_v40 = vmul.u32.u64.high %v1505_v51, %v247_v37, %v1540_v39  ;;  %v327_v45 = vshll.u32 %v1371_v60, %v318_v53 }
  0x58   : > { %v1544_v41 = vmul.u32.u64.low %v1505_v51, %v243_v36  ;;  %v1545_v42 = vmul.u32.u64.high %v1505_v51, %v243_v36, %v1544_v41  ;;  %v323_v43 = vor.u32 %v322_v34, %v321_v16  ;;  %v328_v46 = vshrl.u32 %v1372_v62, %v319_v13 }
  0x59   : > { %v326_v44 = vor.u32 %v325_v38, %v324_v30  ;;  %v330_v47 = vshll.u32 %v1372_v62, %v318_v53  ;;  %v331_v48 = vshrl.u32 %v1373_v0, %v319_v13  ;;  %v333_v49 = vshll.u32 %v1373_v0, %v318_v53 }
  0x5a   : > { %v334_v50 = vshrl.u32 %v1374_v8, %v319_v13  ;;  %v255_v55 = vmul.u32 %v1505_v51, %v239_v35  ;;  %v329_v57 = vor.u32 %v328_v46, %v327_v45  ;;  %vm336_vm8 = vcmp.lt.s32.totalorder %v1507_v52, 1 }
  0x5b   : > { %vm337_vm9 = vcmp.lt.s32.totalorder %v1507_v52, 2  ;;  %vm257_vm10 = vc.u32 %v1541_v40, %v1544_v41  ;;  %v258_v59 = vadd.s32 1, %v1545_v42  ;;  %v332_v61 = vor.u32 %v331_v48, %v330_v47 }
  0x5c   : > { %vm338_vm11 = vcmp.lt.s32.totalorder %v1507_v52, 3  ;;  %v335_v63 = vor.u32 %v334_v50, %v333_v49  ;;  %vm339_vm12 = vcmp.lt.s32.totalorder %v1507_v52, 4  ;;  %v340_v53 = vsel %vm336_vm8, %v320_v33, %v323_v43 }
  0x5d   : > { %v344_v1 = vsel %vm336_vm8, %v323_v43, %v326_v44  ;;  %v259_v51 = vsel %vm257_vm10, %v258_v59, %v1545_v42  ;;  %v341_v3 = vsel %vm339_vm12, %v329_v57, 2102212464  ;;  %v345_v4 = vsel %vm339_vm12, %v332_v61, 920167782 }
  0x5e   : > { %v348_v5 = vsel %vm336_vm8, %v326_v44, %v329_v57  ;;  %v260_v6 = vadd.s32 %v259_v51, %v255_v55  ;;  %v342_v7 = vsel %vm338_vm11, %v326_v44, %v341_v3  ;;  %v346_v9 = vsel %vm338_vm11, %v329_v57, %v345_v4 }
  0x5f   : > { %v349_v10 = vsel %vm339_vm12, %v335_v63, 1326507024  ;;  %v343_v11 = vsel %vm337_vm9, %v340_v53, %v342_v7  ;;  %v347_v12 = vsel %vm337_vm9, %v344_v1, %v346_v9  ;;  %v422_v20 = vand.u32 31, %v1517_v2 }
  0x60   : > { %v350_v13 = vsel %vm338_vm11, %v332_v61, %v349_v10  ;;  %v261_v14 = vadd.s32 536870912, %v260_v6  ;;  %v1570_v16 = vmul.u32.u64.low %v1509_v54, %v347_v12  ;;  %v1571_v17 = vmul.u32.u64.high %v1509_v54, %v347_v12, %v1570_v16 }
  0x61   : > { %v351_v15 = vsel %vm337_vm9, %v348_v5, %v350_v13  ;;  %v359_v27 = vmul.u32 %v1509_v54, %v343_v11  ;;  %v423_v30 = vsub.s32 32, %v422_v20  ;;  %v408_v33 = vand.u32 2147483647, %v1492_v23 }
  0x62   : > { %v1575_v18 = vmul.u32.u64.low %v1509_v54, %v351_v15  ;;  %v1576_v19 = vmul.u32.u64.high %v1509_v54, %v351_v15, %v1575_v18  ;;  %v1579_v25 = vshrl.u32 %v261_v14, 30  ;;  %v362_v52 = vadd.s32 1, %v1571_v17 }
  0x63   : > { %v421_v35 = vshrl.u32 %v1517_v2, 5  ;;  %v425_v36 = vshll.u32 %v1369_v56, %v422_v20  ;;  %v434_v54 = vshll.u32 %v1372_v62, %v422_v20  ;;  %v426_v38 = vshrl.u32 %v1370_v58, %v423_v30 }
  0x64   : > { %v263_v29 = vshll.u32 %v1579_v25, 30  ;;  %vm361_vm13 = vc.u32 %v1576_v19, %v1570_v16  ;;  %v428_v39 = vshll.u32 %v1370_v58, %v422_v20  ;;  %v431_v42 = vshll.u32 %v1371_v60, %v422_v20 }
  0x65   : > { %v363_v32 = vsel %vm361_vm13, %v362_v52, %v1571_v17  ;;  %v429_v44 = vshrl.u32 %v1371_v60, %v423_v30  ;;  %v432_v45 = vshrl.u32 %v1372_v62, %v423_v30  ;;  %v435_v46 = vshrl.u32 %v1373_v0, %v423_v30 }
  0x66   : > { %v264_v31 = vsub.s32 %v260_v6, %v263_v29  ;;  %v364_v34 = vadd.s32 %v363_v32, %v359_v27  ;;  %v415_v48 = vand.u32 8388607, %v408_v33  ;;  %v427_v55 = vor.u32 %v426_v38, %v425_v36 }
  0x67   : > { %v436_v49 = vor.u32 %v435_v46, %v434_v54  ;;  %vm440_vm14 = vcmp.lt.s32.totalorder %v421_v35, 1  ;;  %v430_v57 = vor.u32 %v429_v44, %v428_v39  ;;  %v433_v59 = vor.u32 %v432_v45, %v431_v42 }
  0x68   : > { %v266_v37 = vsub.s32 0, %v264_v31  ;;  %v365_v43 = vadd.s32 536870912, %v364_v34  ;;  %vm443_vm15 = vcmp.lt.s32.totalorder %v421_v35, 4  ;;  %v437_v62 = vshll.u32 %v1373_v0, %v422_v20 }
  0x69   : > { %v438_v61 = vshrl.u32 %v1374_v8, %v423_v30  ;;  %vm442_vm0 = vcmp.lt.s32.totalorder %v421_v35, 3  ;;  %v416_v53 = vor.u32 8388608, %v415_v48  ;;  %v424_v1 = vshrl.u32 %v1369_v56, %v423_v30 }
  0x6a   : > { %v1061_v47 = vmin.u32 %v266_v37, %v264_v31  ;;  %v1597_v2 = vshrl.u32 %v365_v43, 30  ;;  %v449_v51 = vsel %vm443_vm15, %v436_v49, 920167782  ;;  %v256_v3 = vadd.s32 %v1544_v41, %v1541_v40 }
  0x6b   : > { %vm441_vm2 = vcmp.lt.s32.totalorder %v421_v35, 2  ;;  %v445_v4 = vsel %vm443_vm15, %v433_v59, 2102212464  ;;  %v448_v0 = vsel %vm440_vm14, %v427_v55, %v430_v57  ;;  %v450_v8 = vsel %vm442_vm0, %v433_v59, %v449_v51 }
  0x6c   : > { %v268_v50 = vclz %v1061_v47  ;;  %v367_v58 = vshll.u32 %v1597_v2, 30  ;;  %v439_v11 = vor.u32 %v438_v61, %v437_v62  ;;  %v444_v12 = vsel %vm440_vm14, %v424_v1, %v427_v55 }
  0x6d   : > { %v446_v13 = vsel %vm442_vm0, %v430_v57, %v445_v4  ;;  %v456_v40 = vshll.u32 %v416_v53, 8  ;;  %v451_v15 = vsel %vm441_vm2, %v448_v0, %v450_v8  ;;  %v452_v18 = vsel %vm440_vm14, %v430_v57, %v433_v59 }
  0x6e   : > { %v1062_v60 = vadd.s32 4294967294, %v268_v50  ;;  %v368_v63 = vsub.s32 %v364_v34, %v367_v58  ;;  %v447_v29 = vsel %vm441_vm2, %v444_v12, %v446_v13  ;;  %v453_v52 = vsel %vm443_vm15, %v439_v11, 1326507024 }
  0x6f   : > { %v1618_v32 = vmul.u32.u64.low %v456_v40, %v451_v15  ;;  %v1619_v34 = vmul.u32.u64.high %v456_v40, %v451_v15, %v1618_v32  ;;  %v360_v38 = vadd.s32 %v1570_v16, %v1576_v19  ;;  %v463_v45 = vmul.u32 %v456_v40, %v447_v29 }
  0x70   : > { %vm1063_vm1 = vcmp.lt.s32.totalorder %v1062_v60, 0  ;;  %v370_v6 = vsub.s32 0, %v368_v63  ;;  %v286_v55 = vsub.s32 4, %v1579_v25  ;;  %vm202_vm4 = vcmp.lt.s32.totalorder %v1488_v21, 0 }
  0x71   : > { %v271_v5 = vsel %vm1063_vm1, 0, %v1062_v60  ;;  %vm1635_vm6 = vcmp.le.f32.partialorder %v200_v26, 0.7853982  ;;  %vm306_vm7 = vcmp.lt.s32.totalorder %v1490_v22, 0  ;;  %vm305_vm8 = vcmp.le.f32.partialorder %v304_v28, 0.7853982 }
  0x72   : > { %v272_v7 = vsub.s32 32, %v271_v5  ;;  %v273_v9 = vshll.u32 %v264_v31, %v271_v5  ;;  %v276_v10 = vsub.s32 4294967266, %v271_v5  ;;  %v1065_v56 = vmin.u32 %v370_v6, %v368_v63 }
  0x73   : > { %v454_v31 = vsel %vm442_vm0, %v436_v49, %v453_v52  ;;  %v466_v49 = vadd.s32 1, %v1619_v34  ;;  %vm292_vm9 = vweird.f32 %v1488_v21  ;;  %vm826_vm10 = vcmp.eq.s32.totalorder %v1494_v24, 1 }
  0x74   : > { %v274_v41 = vshrl.u32 %v256_v3, %v272_v7  ;;  %v277_v14 = vadd.s32 127, %v276_v10  ;;  %v372_v17 = vclz %v1065_v56  ;;  %v455_v37 = vsel %vm441_vm2, %v452_v18, %v454_v31 }
  0x75   : > { %v1625_v39 = vmul.u32.u64.low %v456_v40, %v455_v37  ;;  %v1626_v42 = vmul.u32.u64.high %v456_v40, %v455_v37, %v1625_v39 }
  0x76   : > { %v275_v20 = vor.u32 %v274_v41, %v273_v9  ;;  %v278_v27 = vshll.u32 %v277_v14, 23  ;;  %v1066_v30 = vadd.s32 4294967294, %v372_v17 }
  0x77   : > { %vm465_vm5 = vc.u32 %v1626_v42, %v1618_v32  ;;  %v464_v29 = vadd.s32 %v1618_v32, %v1626_v42 }
  0x78   : > { %v279_v36 = vor.u32 4788187, %v278_v27  ;;  %v282_v54 = vcvt.s32.f32 %v275_v20  ;;  %vm1067_vm3 = vcmp.lt.s32.totalorder %v1066_v30, 0  ;;  %v467_v57 = vsel %vm465_vm5, %v466_v49, %v1619_v34 }
  0x79   : > { %v375_v44 = vsel %vm1067_vm3, 0, %v1066_v30  ;;  %v468_v62 = vadd.s32 %v467_v57, %v463_v45 }
  0x7a   : > { %v280_v43 = vand.u32 2147483647, %v279_v36  ;;  %v376_v46 = vsub.s32 32, %v375_v44  ;;  %v377_v47 = vshll.u32 %v368_v63, %v375_v44  ;;  %v380_v48 = vsub.s32 4294967266, %v375_v44 }
  0x7b   : > { %v287_v63 = vsel %vm202_vm4, %v286_v55, %v1579_v25  ;;  %v469_v3 = vadd.s32 536870912, %v468_v62  ;;  %v390_v25 = vsub.s32 4, %v1597_v2 }
  0x7c   : > { %v283_v50 = vmul.f32 %v282_v54, %v280_v43  ;;  %v378_v35 = vshrl.u32 %v360_v38, %v376_v46  ;;  %v381_v58 = vadd.s32 127, %v380_v48  ;;  %v289_v5 = vsel %vm1635_vm6, 0, %v287_v63 }
  0x7d   : > { %v1644_v4 = vshrl.u32 %v469_v3, 30  ;;  %v293_v8 = vadd.s32 3, %v289_v5  ;;  %v391_v56 = vsel %vm306_vm7, %v390_v25, %v1597_v2  ;;  %v605_v40 = vand.u32 3, %v289_v5 }
  0x7e   : > { %v284_v19 = vxor.u32 2147483648, %v283_v50  ;;  %v379_v59 = vor.u32 %v378_v35, %v377_v47  ;;  %v382_v60 = vshll.u32 %v381_v58, 23  ;;  %v393_v14 = vsel %vm305_vm8, 0, %v391_v56 }
  0x7f   : > { %v471_v0 = vshll.u32 %v1644_v4, 30  ;;  %v294_v13 = vand.u32 3, %v293_v8  ;;  %vm606_vm12 = vcmp.lt.s32.totalorder %v605_v40, 2  ;;  %vm610_vm13 = vcmp.eq.s32.totalorder %v605_v40, 2 }
  0x80   : > { %v285_v61 = vsel %vm202_vm4, %v284_v19, %v283_v50  ;;  %v383_v1 = vor.u32 4788187, %v382_v60  ;;  %v386_v51 = vcvt.s32.f32 %v379_v59  ;;  %v397_v20 = vadd.s32 3, %v393_v14 }
  0x81   : > { %v288_v53 = vsel %vm1635_vm6, %v1488_v21, %v285_v61  ;;  %v472_v9 = vsub.s32 %v468_v62, %v471_v0  ;;  %vm299_vm11 = vcmp.eq.s32.totalorder %v294_v13, 2  ;;  %vm296_vm14 = vcmp.eq.s32.totalorder %v294_v13, 0 }
  0x82   : > { %1230 = vcosq.f32 %v288_v53  ;;  %v384_v26 = vand.u32 2147483647, %v383_v1  ;;  %vm607_vm15 = vcmp.eq.s32.totalorder %v605_v40, 0  ;;  %vm295_vm0 = vcmp.lt.s32.totalorder %v294_v13, 2 }
  0x83   : > { %1232 = vsinq.f32 %v288_v53  ;;  %v474_v11 = vsub.s32 0, %v472_v9  ;;  %v708_v31 = vand.u32 3, %v393_v14  ;;  %v398_v43 = vand.u32 3, %v397_v20 }
  0x84   : > { %v387_v6 = vmul.f32 %v386_v51, %v384_v26  ;;  %v494_v5 = vsub.s32 4, %v1644_v4 }
  0x85   : > { %v1069_v41 = vmin.u32 %v474_v11, %v472_v9  ;;  %vm403_vm2 = vcmp.eq.s32.totalorder %v398_v43, 2  ;;  %vm713_vm3 = vcmp.eq.s32.totalorder %v708_v31, 2  ;;  %vm400_vm4 = vcmp.eq.s32.totalorder %v398_v43, 0 }
  0x86   : > { %v388_v7 = vxor.u32 2147483648, %v387_v6  ;;  %vm709_vm5 = vcmp.lt.s32.totalorder %v708_v31, 2  ;;  %vm710_vm6 = vcmp.eq.s32.totalorder %v708_v31, 0 }
  0x87   : > { %v476_v15 = vclz %v1069_v41 }
  0x88   : > { %v389_v10 = vsel %vm306_vm7, %v388_v7, %v387_v6  ;;  %vm399_vm7 = vcmp.lt.s32.totalorder %v398_v43, 2 }
  0x89   : > { %v392_v12 = vsel %vm305_vm8, %v1490_v22, %v389_v10  ;;  %v1070_v17 = vadd.s32 4294967294, %v476_v15  ;;  %vm396_vm8 = vweird.f32 %v1490_v22 }
  0x8a   : > { %1234 = vcosq.f32 %v392_v12 }
  0x8b   : > { %1236 = vsinq.f32 %v392_v12  ;;  %vm1071_vm1 = vcmp.lt.s32.totalorder %v1070_v17, 0 }
  0x8c   : > { %v479_v34 = vsel %vm1071_vm1, 0, %v1070_v17 }
  0x8d   : > { %v480_v37 = vsub.s32 32, %v479_v34  ;;  %v481_v38 = vshll.u32 %v472_v9, %v479_v34  ;;  %v484_v45 = vsub.s32 4294967266, %v479_v34 }
  0x8f   : > { %v1231_v28 = vpop.eup %1230  ;;  %v482_v42 = vshrl.u32 %v464_v29, %v480_v37  ;;  %v485_v48 = vadd.s32 127, %v484_v45 }
  0x90   : > { %v1233_v18 = vpop.eup %1232  ;;  %v300_v2 = vxor.u32 2147483648, %v1231_v28 }
  0x91   : > { %v297_v27 = vxor.u32 2147483648, %v1233_v18  ;;  %v483_v49 = vor.u32 %v482_v42, %v481_v38  ;;  %v486_v55 = vshll.u32 %v485_v48, 23 }
  0x92   : > { %v301_v52 = vsel %vm299_vm11, %v300_v2, %v1233_v18  ;;  %v612_v30 = vsel %vm610_vm13, %v300_v2, %v1233_v18  ;;  %vm409_vm11 = vcmp.le.f32.partialorder %v408_v33, 0.7853982 }
  0x93   : > { %v298_v36 = vsel %vm296_vm14, %v1231_v28, %v297_v27  ;;  %v609_v54 = vsel %vm607_vm15, %v1231_v28, %v297_v27  ;;  %v487_v19 = vor.u32 4788187, %v486_v55  ;;  %v490_v21 = vcvt.s32.f32 %v483_v49 }
  0x94   : > { %v302_v39 = vsel %vm295_vm0, %v298_v36, %v301_v52  ;;  %v613_v44 = vsel %vm606_vm12, %v609_v54, %v612_v30 }
  0x95   : > { %v303_v46 = vsel %vm292_vm9, nan, %v302_v39  ;;  %v614_v32 = vsel %vm292_vm9, nan, %v613_v44  ;;  %v488_v61 = vand.u32 2147483647, %v487_v19  ;;  %vm410_vm9 = vcmp.lt.s32.totalorder %v1492_v23, 0 }
  0x96   : > { %v827_v47 = vsel %vm826_vm10, %v303_v46, %v614_v32  ;;  %v495_v25 = vsel %vm410_vm9, %v494_v5, %v1644_v4 }
  0x97   : > { %v1235_v50 = vpop.eup %1234  ;;  %v491_v3 = vmul.f32 %v490_v21, %v488_v61  ;;  %v497_v7 = vsel %vm409_vm11, 0, %v495_v25 }
  0x98   : > { %v1237_v35 = vpop.eup %1236  ;;  %v404_v58 = vxor.u32 2147483648, %v1235_v50  ;;  %v501_v9 = vadd.s32 3, %v497_v7  ;;  %v811_v11 = vand.u32 3, %v497_v7 }
  0x99   : > { %v401_v16 = vxor.u32 2147483648, %v1237_v35  ;;  %v492_v22 = vxor.u32 2147483648, %v491_v3 }
  0x9a   : > { %v405_v57 = vsel %vm403_vm2, %v404_v58, %v1237_v35  ;;  %v715_v59 = vsel %vm713_vm3, %v404_v58, %v1237_v35  ;;  %v502_v10 = vand.u32 3, %v501_v9  ;;  %vm816_vm13 = vcmp.eq.s32.totalorder %v811_v11, 2 }
  0x9b   : > { %v402_v60 = vsel %vm400_vm4, %v1235_v50, %v401_v16  ;;  %v712_v62 = vsel %vm710_vm6, %v1235_v50, %v401_v16  ;;  %v493_v0 = vsel %vm410_vm9, %v492_v22, %v491_v3  ;;  %vm813_vm15 = vcmp.eq.s32.totalorder %v811_v11, 0 }
  0x9c   : > { %v406_v63 = vsel %vm399_vm7, %v402_v60, %v405_v57  ;;  %v716_v53 = vsel %vm709_vm5, %v712_v62, %v715_v59  ;;  %v496_v8 = vsel %vm409_vm11, %v1492_v23, %v493_v0  ;;  %vm507_vm12 = vcmp.eq.s32.totalorder %v502_v10, 2 }
  0x9d   : > { %v407_v1 = vsel %vm396_vm8, nan, %v406_v63  ;;  %v717_v51 = vsel %vm396_vm8, nan, %v716_v53  ;;  %1238 = vcosq.f32 %v496_v8  ;;  %vm504_vm14 = vcmp.eq.s32.totalorder %v502_v10, 0 }
  0x9e   : > { %v828_v26 = vsel %vm826_vm10, %v407_v1, %v717_v51  ;;  %1240 = vsinq.f32 %v496_v8  ;;  %vm503_vm0 = vcmp.lt.s32.totalorder %v502_v10, 2  ;;  %vm812_vm1 = vcmp.lt.s32.totalorder %v811_v11, 2 }
  0x9f   : > { %v830_v6 = vpack.c.bf16 %v828_v26, %v827_v47  ;;  %vm500_vm2 = vweird.f32 %v1492_v23  ;;  %v1084_v23 = vld [vmem:[%s1732_s2] ss:$0 sm:$0xff] }
  0xa1   : > { %1134 = vmatprep.mubr.bf16.mxu0 %v830_v6 }
  0xaa   : > { %v1239_v56 = vpop.eup %1238 }
  0xab   : > { %v1241_v12 = vpop.eup %1240  ;;  %v508_v13 = vxor.u32 2147483648, %v1239_v56 }
  0xac   : > { %v505_v33 = vxor.u32 2147483648, %v1241_v12 }
  0xad   : > { %v509_v4 = vsel %vm507_vm12, %v508_v13, %v1241_v12  ;;  %v818_v40 = vsel %vm816_vm13, %v508_v13, %v1241_v12 }
  0xae   : > { %v506_v41 = vsel %vm504_vm14, %v1239_v56, %v505_v33  ;;  %v815_v14 = vsel %vm813_vm15, %v1239_v56, %v505_v33 }
  0xaf   : > { %v510_v15 = vsel %vm503_vm0, %v506_v41, %v509_v4  ;;  %v819_v28 = vsel %vm812_vm1, %v815_v14, %v818_v40 }
  0xb0   : > { %v511_v17 = vsel %vm500_vm2, nan, %v510_v15  ;;  %v820_v18 = vsel %vm500_vm2, nan, %v819_v28 }
  0xb1   : > { %v829_v2 = vsel %vm826_vm10, %v511_v17, %v820_v18 }
  0xb2   : > { %v831_v20 = vpack.c.bf16 %v829_v2, %v829_v2 }
  0xb4   : > { %1135 = vmatmul.mubr.bf16.vlgmr.msra.gmra.mxu0 %v831_v20 }
 0x174   : > { %v1136_v27 = vpop.f32.mrf.mxu0 }
 0x175   : > { %v946_v29 = vadd.f32 %v1136_v27, %v1084_v23 }
 0x176   : > { %v937_v52 = vpop.f32.mrf.mxu0 }
 0x177   : > { %v1101_v30 = vpack.c.bf16 %v946_v29, %v946_v29  ;;  %v938_v34 = vadd.f32 %v1084_v23, %v937_v52 }
 0x178   : > { %v1137_v31 = vpop.f32.mrf.mxu0 }
 0x179   : > { %966 = vst [vmem:[%s176_s26 + $0x8] sm:$0xf] %v1101_v30 }
 0x17a   : > { %v940_v24 = vpop.f32.mrf.mxu0 }
 0x17b   : > { %v941_v36 = vadd.f32 %v1084_v23, %v940_v24 }
 0x17d   : > { %v1106_v54 = vpack.c.bf16 %v941_v36, %v938_v34 }
 0x17f   : > { %1107 = vst [vmem:[%s176_s26] sm:$0xff] %v1106_v54  }
 0x180   : > { %1307 = shalt.err (!%p1304_p0)
}
 0x181   : > { %s1308_s8 = scalar_lea.hbm %s1688_s30, 192  ;;  %s1312_s11 = scalar_lea.hbm %s1733_s3, 768 }
 0x182   : > { %p1309_p1 = scmp.ne.s32.totalorder %s1688_s30, %s1308_s8  ;;  %p1313_p9 = scmp.lt.s32.totalorder %s1688_s30, %s1733_s3 }
 0x183   : > { %p1314_p5 = scmp.lt.s32.totalorder %s1312_s11, %s1308_s8 }
 0x184   : > { %p1310_p2 = pnand %p1309_p1, %p1748_p12 }
 0x185   : > { %p1315_p6 = por %p1314_p5, %p1313_p9 }
 0x186   : > { %p1311_p3 = pneg %p1310_p2 }
 0x188   : > { %p1316_p10 = pnand %p1315_p6, %p1311_p3 }
 0x18a   : > { %1319 = shalt.err (!%p1316_p10)
}
 0x18b   : > { %s1376_s20 = smov 64   ;;  %s1377_s24 = smov 4  }
 0x18c   : > { %1159 = dma.vmem_to_hbm [thread:$0]  (%p1748_p12), %s1683_s27, 192, %s1688_s30, %s1690_s4, %s1376_s20, %s1376_s20, %s1377_s24  }
 0x18d PF: > { %p1176_p13 = scmp.ge.s32.totalorder %s1362_s15, 2  ;;  %s996_s25 = sand.u32 1, %s1350_s12  }
 0x18e   : > { %p1749_p4 = scmp.ne.s32.totalorder %s1738_s23, 0  ;;  %s997_s26 = scalar_lea.sflag [#allocation4], %s996_s25 }
 0x190   : > { %p1169_p7 = pnand %p1176_p13, %p1749_p4 }
 0x192   : > { %p1170_p8 = pneg %p1169_p7 }
 0x194   : > { %1345 = dma.done.wait (%p1170_p8), %s997_s26, 192  }
 0x195   : > { %1347 = vsyncadd (%p1170_p8), %s997_s26, 4294967104  ;;  %p15_p11 = scmp.ge.s32.totalorder %s1423_s18, 6   ;;  %s1750_s12 = smov %s1354_s13 }
 0x196   : > { %s1751_s13 = smov %s1358_s14  ;;  %s1752_s14 = smov %s1434_s21 }
 0x197   : > { %s1753_s15 = smov %s1423_s18  ;;  %17 = sbr.rel (!%p15_p11) target bundleno = 5 (0x5), region = 73 }
 0x19c   :  { %1002 = vsyncpa [#allocation3], 1 }
 0x19d   :  { %1004 = vsyncpa [#allocation3 + $0x1], 1 }
 0x19e   :  { %1005 = vsyncpa [#allocation6], 1 }
 0x19f   :  { %1006 = vsyncpa [#allocation4], 1 }
 0x1a0   :  { %1008 = vsyncpa [#allocation4 + $0x1], 1 }

</bundles_post_ra>
